<compile_context>
chip_gen: v7x
topology: tpu7x:2x2x1
jax: 0.10.0
libtpu: 0.0.40
codegen_flags: <defaults>
</compile_context>

<pallas_src>
import functools

import jax
import jax.numpy as jnp
from jax.experimental import pallas as pl
from jax.experimental.pallas import tpu as pltpu

_NEG_BIG = -1e30  # finite "-inf": exp(-1e30 - m) underflows to exactly 0 in f32


def _focal_loss_kernel(x_ref, t_ref, part_ref, acc_ref, *, gamma, int_gamma):
    """One grid step processes a (TN, Cp) block of logits.

    x_ref   : (TN, Cp) logits, class axis padded to a lane multiple with _NEG_BIG
    t_ref   : (TN, 1)  int32 targets; -1 marks padded (invalid) rows
    part_ref: (1, 8, 128) f32 per-part partial sum slab (only [0,0,0] is read back)
    acc_ref : (TN, 1)  f32 VMEM scratch, per-row running sum over the reduction axis
    """
    s = pl.program_id(1)

    @pl.when(s == 0)
    def _():
        acc_ref[...] = jnp.zeros_like(acc_ref)

    x = x_ref[...].astype(jnp.float32)                          # (TN, Cp)
    t = t_ref[...]                                              # (TN, 1)

    # Row log-sum-exp: the ONLY full-tile transcendental in the kernel.
    m = jnp.max(x, axis=-1, keepdims=True)                      # (TN, 1)
    lse = jnp.log(jnp.sum(jnp.exp(x - m), axis=-1, keepdims=True))

    # Gather the target-class logit FIRST (one-hot select), then do the focal
    # math on (TN, 1) vectors only.
    cls = jax.lax.broadcasted_iota(jnp.int32, x.shape, 1)       # (TN, Cp)
    x_t = jnp.sum(jnp.where(cls == t, x, 0.0), axis=-1, keepdims=True)

    log_p_t = x_t - m - lse                                     # (TN, 1)
    p_t = jnp.exp(log_p_t)
    one_minus = 1.0 - p_t
    if int_gamma is not None:                                   # VPU multiplies
        w = jnp.ones_like(one_minus)
        for _ in range(int_gamma):
            w = w * one_minus
    else:                                                       # generic pow path
        w = one_minus ** gamma
    focal_t = w * log_p_t                                       # (TN, 1)

    valid = t >= 0                                              # mask padded rows
    acc_ref[...] += jnp.where(valid, focal_t, 0.0)

    @pl.when(s == pl.num_programs(1) - 1)
    def _():
        # NLL negation + single cross-sublane reduce, once per part.
        part_ref[...] = jnp.zeros_like(part_ref) - jnp.sum(acc_ref[...])


def focal_loss(logits, targets, *, gamma=2.0, block_n=None, num_parts=None):
    """Focal loss, reduction='mean', weight=None.

    logits : (N, C) float array
    targets: (N,)   integer class indices
    returns: scalar float32 loss
    """
    n, c = logits.shape

    # Pad the class (lane) axis to a multiple of 128 for lane-dense loads.
    c_pad = ((c + 127) // 128) * 128
    x = logits
    if c_pad != c:
        x = jnp.pad(x, ((0, 0), (0, c_pad - c)), constant_values=_NEG_BIG)
    t = targets.astype(jnp.int32)

    # Row tile from a VMEM budget safe across v5e/v6e/v7x (double-buffered input).
    if block_n is None:
        budget = 8 * 1024 * 1024
        bn = budget // (2 * 4 * c_pad)
        bn = max(8, min(1024, (bn // 8) * 8))
        block_n = int(min(bn, ((n + 7) // 8) * 8))
    assert block_n % 8 == 0 and block_n > 0, "block_n must be a multiple of 8"

    steps_total = -(-n // block_n)
    if num_parts is None:
        num_parts = 2 if steps_total >= 2 else 1  # feed v7x's 2nd TensorCore
    steps = -(-steps_total // num_parts)
    n_pad = num_parts * steps * block_n

    # Row padding: logits -> 0 (finite), targets -> -1 (masked in-kernel).
    if n_pad != n:
        x = jnp.pad(x, ((0, n_pad - n), (0, 0)))
        t = jnp.pad(t, (0, n_pad - n), constant_values=-1)
    t2 = t.reshape(n_pad, 1)

    int_gamma = (int(gamma)
                 if float(gamma).is_integer() and 0.0 <= gamma <= 8.0 else None)
    kernel = functools.partial(_focal_loss_kernel, gamma=float(gamma),
                               int_gamma=int_gamma)

    partials = pl.pallas_call(
        kernel,
        out_shape=jax.ShapeDtypeStruct((num_parts, 8, 128), jnp.float32),
        grid_spec=pltpu.PrefetchScalarGridSpec(
            num_scalar_prefetch=0,
            grid=(num_parts, steps),
            in_specs=[
                pl.BlockSpec((block_n, c_pad), lambda p, s: (p * steps + s, 0)),
                pl.BlockSpec((block_n, 1), lambda p, s: (p * steps + s, 0)),
            ],
            out_specs=pl.BlockSpec((1, 8, 128), lambda p, s: (p, 0, 0)),
            scratch_shapes=[pltpu.VMEM((block_n, 1), jnp.float32)],
        ),
        compiler_params=pltpu.CompilerParams(
            dimension_semantics=("parallel", "arbitrary"),
            vmem_limit_bytes=32 * 1024 * 1024,
        ),
    )(x, t2)

    # reduction='mean' with weight=None => divide by the true sample count.
    return jnp.sum(partials[:, 0, 0]) / jnp.float32(n)


def focal_loss_ref(logits, targets, gamma=2.0):
    """Pure-JAX reference (matches the PyTorch module semantics)."""
    x = logits.astype(jnp.float32)
    log_prob = jax.nn.log_softmax(x, axis=-1)
    prob = jnp.exp(log_prob)
    focal = (1.0 - prob) ** gamma * log_prob
    picked = jnp.take_along_axis(focal, targets[:, None].astype(jnp.int32),
                                 axis=-1)[:, 0]
    return jnp.mean(-picked)


if __name__ == "__main__":
    key = jax.random.PRNGKey(0)
    k1, k2, k3, k4 = jax.random.split(key, 4)

    # Case 1: exercises class padding (C=10 -> 128) and the 2-part parallel split.
    N, C = 16, 10
    logits = jax.random.normal(k1, (N, C), dtype=jnp.float32)
    targets = jax.random.randint(k2, (N,), 0, C, dtype=jnp.int32)
    loss = jax.block_until_ready(focal_loss(logits, targets, gamma=2.0, block_n=8))
    ref = focal_loss_ref(logits, targets, gamma=2.0)
    assert jnp.allclose(loss, ref, rtol=1e-5, atol=1e-6), (loss, ref)

    # Case 2: ragged N (row padding + target=-1 masking) with auto tile sizing.
    N2, C2 = 13, 10
    logits2 = jax.random.normal(k3, (N2, C2), dtype=jnp.float32)
    targets2 = jax.random.randint(k4, (N2,), 0, C2, dtype=jnp.int32)
    loss2 = jax.block_until_ready(focal_loss(logits2, targets2, gamma=2.0))
    ref2 = focal_loss_ref(logits2, targets2, gamma=2.0)
    assert jnp.allclose(loss2, ref2, rtol=1e-5, atol=1e-6), (loss2, ref2)

    print("KERNEL_OK")
</pallas_src>

<mosaic_0001>
module attributes {stable_mosaic.version = 11 : i64} {
  func.func @_focal_loss_kernel(%arg0: i32, %arg1: i32, %arg2: memref<8x128xf32, #tpu.memory_space<vmem>>, %arg3: memref<8x1xi32, #tpu.memory_space<vmem>>, %arg4: memref<1x8x128xf32, #tpu.memory_space<vmem>>, %arg5: memref<8x1xf32, #tpu.memory_space<vmem>>) attributes {dimension_semantics = [#tpu.dimension_semantics<parallel>, #tpu.dimension_semantics<arbitrary>], iteration_bounds = array<i64: 2, 1>, scalar_prefetch = 0 : i64, scratch_operands = 1 : i64, tpu.core_type = #tpu.core_type<tc>, window_params = [{transform_indices = @transform_0, window_bounds = array<i64: 8, 128>}, {transform_indices = @transform_1, window_bounds = array<i64: 8, 1>}, {transform_indices = @transform_2, window_bounds = array<i64: 1, 8, 128>}]} {
    %c0_i32 = arith.constant 0 : i32
    %0 = arith.cmpi eq, %arg1, %c0_i32 : i32
    %1 = arith.extui %0 : i1 to i32
    %c0_i32_0 = arith.constant 0 : i32
    %2 = arith.cmpi ne, %1, %c0_i32_0 : i32
    scf.if %2 {
      %cst_17 = arith.constant 0.000000e+00 : f32
      %39 = vector.broadcast %cst_17 : f32 to vector<8x1xf32>
      %c0_18 = arith.constant 0 : index
      %c0_19 = arith.constant 0 : index
      %40 = vector.load %arg5[%c0_18, %c0_19] : memref<8x1xf32, #tpu.memory_space<vmem>>, vector<8x1xf32>
      tpu.vector_store %arg5[%c0_18, %c0_19], %39 {strides = array<i32>} : memref<8x1xf32, #tpu.memory_space<vmem>>, vector<8x1xf32>,
    } else {
    }
    %c0 = arith.constant 0 : index
    %c0_1 = arith.constant 0 : index
    %3 = vector.load %arg2[%c0, %c0_1] : memref<8x128xf32, #tpu.memory_space<vmem>>, vector<8x128xf32>
    %c0_2 = arith.constant 0 : index
    %c0_3 = arith.constant 0 : index
    %4 = vector.load %arg3[%c0_2, %c0_3] : memref<8x1xi32, #tpu.memory_space<vmem>>, vector<8x1xi32>
    %cst = arith.constant dense<0xFF800000> : vector<8xf32>
    %5 = vector.multi_reduction <maximumf>, %3, %cst [1] : vector<8x128xf32> to vector<8xf32>
    %6 = vector.shape_cast %5 : vector<8xf32> to vector<8x1xf32>
    %7 = vector.broadcast %6 : vector<8x1xf32> to vector<8x128xf32>
    %8 = arith.subf %3, %7 : vector<8x128xf32>
    %9 = math.exp %8 : vector<8x128xf32>
    %cst_4 = arith.constant dense<0.000000e+00> : vector<8xf32>
    %10 = vector.multi_reduction <add>, %9, %cst_4 [1] : vector<8x128xf32> to vector<8xf32>
    %11 = vector.shape_cast %10 : vector<8xf32> to vector<8x1xf32>
    %12 = math.log %11 : vector<8x1xf32>
    %13 = tpu.iota {dimensions = array<i32: 1>} : vector<8x128xi32>
    %14 = vector.broadcast %4 : vector<8x1xi32> to vector<8x128xi32>
    %15 = arith.cmpi eq, %13, %14 : vector<8x128xi32>
    %cst_5 = arith.constant 0.000000e+00 : f32
    %16 = vector.broadcast %cst_5 : f32 to vector<8x128xf32>
    %17 = arith.select %15, %3, %16 : vector<8x128xi1>, vector<8x128xf32>
    %cst_6 = arith.constant dense<0.000000e+00> : vector<8xf32>
    %18 = vector.multi_reduction <add>, %17, %cst_6 [1] : vector<8x128xf32> to vector<8xf32>
    %19 = vector.shape_cast %18 : vector<8xf32> to vector<8x1xf32>
    %20 = arith.subf %19, %6 : vector<8x1xf32>
    %21 = arith.subf %20, %12 : vector<8x1xf32>
    %22 = math.exp %21 : vector<8x1xf32>
    %cst_7 = arith.constant 1.000000e+00 : f32
    %23 = vector.broadcast %cst_7 : f32 to vector<8x1xf32>
    %24 = arith.subf %23, %22 : vector<8x1xf32>
    %cst_8 = arith.constant 1.000000e+00 : f32
    %25 = vector.broadcast %cst_8 : f32 to vector<8x1xf32>
    %26 = arith.mulf %25, %24 : vector<8x1xf32>
    %27 = arith.mulf %26, %24 : vector<8x1xf32>
    %28 = arith.mulf %27, %21 : vector<8x1xf32>
    %c0_i32_9 = arith.constant 0 : i32
    %29 = vector.broadcast %c0_i32_9 : i32 to vector<8x1xi32>
    %30 = arith.cmpi sge, %4, %29 : vector<8x1xi32>
    %c0_10 = arith.constant 0 : index
    %c0_11 = arith.constant 0 : index
    %31 = vector.load %arg5[%c0_10, %c0_11] : memref<8x1xf32, #tpu.memory_space<vmem>>, vector<8x1xf32>
    %cst_12 = arith.constant 0.000000e+00 : f32
    %32 = vector.broadcast %cst_12 : f32 to vector<8x1xf32>
    %33 = arith.select %30, %28, %32 : vector<8x1xi1>, vector<8x1xf32>
    %34 = arith.addf %31, %33 : vector<8x1xf32>
    %c0_13 = arith.constant 0 : index
    %c0_14 = arith.constant 0 : index
    %35 = vector.load %arg5[%c0_13, %c0_14] : memref<8x1xf32, #tpu.memory_space<vmem>>, vector<8x1xf32>
    tpu.vector_store %arg5[%c0_13, %c0_14], %34 {strides = array<i32>} : memref<8x1xf32, #tpu.memory_space<vmem>>, vector<8x1xf32>,
    %c0_i32_15 = arith.constant 0 : i32
    %36 = arith.cmpi eq, %arg1, %c0_i32_15 : i32
    %37 = arith.extui %36 : i1 to i32
    %c0_i32_16 = arith.constant 0 : i32
    %38 = arith.cmpi ne, %37, %c0_i32_16 : i32
    scf.if %38 {
      %cst_17 = arith.constant 0.000000e+00 : f32
      %39 = vector.broadcast %cst_17 : f32 to vector<1x8x128xf32>
      %c0_18 = arith.constant 0 : index
      %c0_19 = arith.constant 0 : index
      %40 = vector.load %arg5[%c0_18, %c0_19] : memref<8x1xf32, #tpu.memory_space<vmem>>, vector<8x1xf32>
      %41 = vector.shape_cast %40 : vector<8x1xf32> to vector<1x8x1xf32>
      %cst_20 = arith.constant dense<0.000000e+00> : vector<1xf32>
      %42 = vector.multi_reduction <add>, %41, %cst_20 [1, 2] : vector<1x8x1xf32> to vector<1xf32>
      %43 = vector.shape_cast %42 : vector<1xf32> to vector<1x1x1xf32>
      %44 = vector.extract %43[0, 0, 0] : f32 from vector<1x1x1xf32>
      %45 = vector.broadcast %44 : f32 to vector<1x8x128xf32>
      %46 = arith.subf %39, %45 : vector<1x8x128xf32>
      %c0_21 = arith.constant 0 : index
      %c0_22 = arith.constant 0 : index
      %c0_23 = arith.constant 0 : index
      %47 = vector.load %arg4[%c0_21, %c0_22, %c0_23] : memref<1x8x128xf32, #tpu.memory_space<vmem>>, vector<1x8x128xf32>
      tpu.vector_store %arg4[%c0_21, %c0_22, %c0_23], %46 {strides = array<i32>} : memref<1x8x128xf32, #tpu.memory_space<vmem>>, vector<1x8x128xf32>,
    } else {
    }
    return
  }
  func.func @transform_0(%arg0: i32, %arg1: i32) -> (i32, i32) {
    %c1_i32 = arith.constant 1 : i32
    %0 = arith.muli %arg0, %c1_i32 : i32
    %1 = arith.addi %0, %arg1 : i32
    %c0_i32 = arith.constant 0 : i32
    %c0_i32_0 = arith.constant 0 : i32
    return %1, %c0_i32 : i32, i32
  }
  func.func @transform_1(%arg0: i32, %arg1: i32) -> (i32, i32) {
    %c1_i32 = arith.constant 1 : i32
    %0 = arith.muli %arg0, %c1_i32 : i32
    %1 = arith.addi %0, %arg1 : i32
    %c0_i32 = arith.constant 0 : i32
    %c0_i32_0 = arith.constant 0 : i32
    return %1, %c0_i32 : i32, i32
  }
  func.func @transform_2(%arg0: i32, %arg1: i32) -> (i32, i32, i32) {
    %c0_i32 = arith.constant 0 : i32
    %c0_i32_0 = arith.constant 0 : i32
    %c0_i32_1 = arith.constant 0 : i32
    return %arg0, %c0_i32, %c0_i32_0 : i32, i32, i32
  }
}

</mosaic_0001>

<bundles_post_ra>
// kernel: tpu_custom_call.1
= control target key start
LH: loop header
LB: loop body
LE: loop exit
PB: predicated region body
PF: predicated region fallthrough
CT: control target
= control target key end

     0   :  { %7 = vsyncpa [#allocation4], 0  ;;  %s625_s0 = inlined_call_operand.vmem [shape: f32[16,128], index: 0, kind: input, shape index: {}]   ;;  %s626_s1 = inlined_call_operand.vmem [shape: s32[16,1], index: 1, kind: input, shape index: {}]   ;;  %s627_s2 = inlined_call_operand.hbm [shape: f32[2,8,128], index: 2, kind: output, shape index: {}]  }
   0x1   :  { %9 = vsyncpa [#allocation4 + $0x1], 0  ;;  %s507_s9 = smov 0   ;;  %s509_s10 = smov 0  }
   0x2   :  { %s511_s11 = smov 0   ;;  %s513_s12 = smov 0  }
   0x3   :  { %s515_s13 = smov 0   ;;  %s517_s14 = smov 0  }
   0x4 LB: > { %s331_s15 = sadd.s32 4294967295, %s487_s14   ;;  %s332_s16 = sadd.s32 4294967294, %s487_s14   ;;  %s487_s14 = sphi %s517_s14, %s15_s14   ;;  %s483_s13 = sphi %s515_s13, %s634_s13   ;;  %s479_s12 = sphi %s513_s12, %s633_s12   ;;  %s475_s11 = sphi %s511_s11, %s632_s11   ;;  %s471_s10 = sphi %s509_s10, %s631_s10   ;;  %s467_s9 = sphi %s507_s9, %s630_s9  }
   0x5   : > { %s27_s17 = sadd.s32 1, %s483_s13  ;;  %s90_s18 = sadd.s32 1, %s475_s11 }
   0x6   : > { %p29_p0 = scmp.ge.s32.totalorder %s27_s17, 2  ;;  %p100_p1 = scmp.ne.s32.totalorder %s475_s11, %s471_s10 }
   0x7   : > { %p101_p2 = scmp.eq.s32.totalorder %s331_s15, 1  ;;  %p106_p3 = scmp.ne.s32.totalorder %s471_s10, %s467_s9 }
   0x8   : > { %s636_s17 = smov (%p29_p0, %s27_s17), 0  ;;  %p107_p5 = scmp.eq.s32.totalorder %s332_s16, 1 }
   0x9   : > { %p547_p4 = por %p101_p2, %p100_p1  ;;  %s87_s20 = ssub.s32 %s483_s13, %s636_s17 }
   0xa   : > { %p335_p6 = scmp.ge.s32.totalorder %s487_s14, 1  ;;  %p88_p7 = scmp.eq.s32.totalorder %s87_s20, 0 }
   0xb   : > { %p554_p8 = por %p107_p5, %p106_p3  ;;  %p143_p9 = scmp.lt.s32.totalorder %s487_s14, 3 }
   0xc   : > { %s560_s22 = scalar_select %p88_p7, %s475_s11, %s90_s18  }
   0xd   : > { %p144_p10 = pnand %p335_p6, %p143_p9 }
   0xe   : > { %p171_p11 = scmp.lt.s32.totalorder (!%p144_p10), %s479_s12, 1  ;;  %v489_v0 = vmov (!%p144_p10), 0   ;;  %v199_v6 = vlaneseq (!%p144_p10)  ;;  %vm186_vm1 = vcmask (!%p144_p10), 7168   ;;  %v490_v11 = vmov (!%p144_p10), 0.0   ;;  %s167_s3 = sand.u32 (!%p144_p10), 1, %s471_s10  }
   0xf   : > { %147 = sbr.rel (%p144_p10) target bundleno = 593 (0x251), region = 28  ;;  %402 = vset.pattern.permute.xlu0 (!%p144_p10), %v489_v0  ;;  %187 = vst.msk [vmem:[#allocation2] sm:$0xff] (!%p144_p10), %vm186_vm1, %v490_v11  ;;  %s336_s4 = sshll.u32 (!%p144_p10), %s167_s3, 3 }
  0x10   : > { %v200_v7 = vand.u32 (!%p144_p10), 127, %v199_v6  ;;  %s340_s5 = sshll.u32 (!%p144_p10), %s479_s12, 7  ;;  %s169_s6 = scalar_lea.vmem (!%p144_p10), [#allocation3], %s336_s4 }
  0x11   : > { %s252_s7 = sshll.u32 (!%p144_p10), %s169_s6, 4  ;;  %s578_s18 = scalar_lea.hbm (!%p144_p10), %s627_s2, %s340_s5  ;;  %s580_s7 = int_to_ptr.vmem [resolvable:$true] %s252_s7 }
  0x12   : > { %s239_s20 = scalar_lea.sflag (!%p144_p10), [#allocation4], %s167_s3 }
  0x16   : > { %s172_s23 = scalar_select %p171_p11, %s479_s12, 1  ;;  %v216_v23 = vld [vmem:[#allocation2] sm:$0xff] }
  0x17   : > { %s491_s12 = smov [#allocation3]  }
  0x18   : > { %s337_s24 = sshll.u32 %s172_s23, 3  ;;  %s409_s23 = scalar_lea.vmem %s580_s7, 128 }
  0x19   : > { %s174_s27 = scalar_lea.vmem %s625_s0, %s337_s24  ;;  %s180_s30 = scalar_lea.vmem %s626_s1, %s337_s24 }
  0x1a   : > { %v188_v1 = vld [vmem:[%s174_s27] sm:$0xff]  ;;  %p410_p12 = scmp.ne.s32.totalorder %s580_s7, %s409_s23  ;;  %s413_s24 = sshll.u32 %s491_s12, 4  ;;  %s414_s24 = int_to_ptr.vmem [resolvable:$false] %s413_s24 }
  0x1b   : > { %190 = vmax.xlane.f32.xlu0 %v188_v1  ;;  %v189_v2 = vld [vmem:[%s180_s30] sm:$0xff]  ;;  %s415_s25 = scalar_lea.vmem %s414_s24, 256  ;;  %p416_p1 = scmp.lt.s32.totalorder %s580_s7, %s414_s24 }
  0x1c   : > { %vm215_vm2 = vcmp.ge.s32.totalorder %v189_v2, 0  ;;  %p411_p13 = pnand %p410_p12, %p547_p4  ;;  %p417_p2 = scmp.lt.s32.totalorder %s415_s25, %s409_s23 }
  0x1e   : > { %p412_p0 = pneg %p411_p13  ;;  %p418_p3 = por %p417_p2, %p416_p1 }
  0x20   : > { %p419_p5 = pnand %p418_p3, %p412_p0 }
  0x31   : > { %202 = vperm.xlu0 %402, %v189_v2  }
  0xa8   : > { %v191_v3 = vpop.xlane.xlu0 %190 }
  0xa9   : > { %v192_v4 = vsub.f32 %v188_v1, %v191_v3 }
  0xab   : > { %v193_v5 = vmul.f32 1.442695, %v192_v4 }
  0xad   : > { %403 = vpow2.f32 %v193_v5 }
  0xb0   : > { %v203_v8 = vpop.permute.xlu0 %202 }
  0xb1   : > { %vm204_vm0 = vcmp.eq.s32.totalorder %v200_v7, %v203_v8 }
  0xb2   : > { %v205_v10 = vsel %vm204_vm0, %v188_v1, 0.0 }
  0xb7   : > { %v404_v9 = vpop.eup %403 }
  0xb8   : > { %195 = vadd.xlane.f32.xlu1 %v404_v9 }
  0xbc   : > { %206 = vadd.xlane.f32.xlu1 %v205_v10 }
 0x145   : > { %v196_v12 = vpop.xlane.xlu1 %195 }
 0x146   : > { %405 = vlog2.f32 %v196_v12 }
 0x149   : > { %v207_v13 = vpop.xlane.xlu1 %206 }
 0x14a   : > { %v208_v16 = vsub.f32 %v207_v13, %v191_v3 }
 0x150   : > { %v406_v14 = vpop.eup %405 }
 0x151   : > { %v198_v15 = vmul.f32 0.6931472, %v406_v14 }
 0x153   : > { %v209_v17 = vsub.f32 %v208_v16, %v198_v15 }
 0x155   : > { %v210_v18 = vmul.f32 1.442695, %v209_v17 }
 0x157   : > { %407 = vpow2.f32 %v210_v18 }
 0x161   : > { %v408_v19 = vpop.eup %407 }
 0x162   : > { %v212_v20 = vsub.f32 1.0, %v408_v19 }
 0x164   : > { %v213_v21 = vmul.f32 %v212_v20, %v212_v20 }
 0x166   : > { %v214_v22 = vmul.f32 %v213_v21, %v209_v17 }
 0x168   : > { %v217_v24 = vsel %vm215_vm2, %v214_v22, 0.0 }
 0x169   : > { %v218_v25 = vadd.f32 %v217_v24, %v216_v23 }
 0x16b   : > { %220 = vst.msk [vmem:[#allocation2] sm:$0xff] %vm186_vm1, %v218_v25 }
 0x172   : > { %v224_v26 = vld [vmem:[#allocation2] sm:$0xff] }
 0x173   : > { %v225_v27 = vsel %vm186_vm1, %v224_v26, 0.0 }
 0x174   : > { %226 = vadd.xlane.f32.xlu1 %v225_v27 }
 0x201   : > { %v227_v28 = vpop.xlane.xlu1 %226 }
 0x202   : > { %v228_v29 = vrot.slane %v227_v28, 4 }
 0x204   : > { %v229_v30 = vadd.f32 %v228_v29, %v227_v28 }
 0x206   : > { %v230_v31 = vrot.slane %v229_v30, 2 }
 0x208   : > { %v231_v32 = vadd.f32 %v230_v31, %v229_v30 }
 0x20a   : > { %v232_v33 = vrot.slane %v231_v32, 1 }
 0x20c   : > { %v233_v34 = vadd.f32 %v232_v33, %v231_v32 }
 0x20e   : > { %343 = vpush %v233_v34 }
 0x23f   : > { %s344_s8 = spop %343 }
 0x240   : > { %v235_v35 = vstv %s344_s8 }
 0x241   : > { %v236_v36 = vsub.f32 0.0, %v235_v35 }
 0x243   : > { %237 = vst [vmem:[%s169_s6] sm:$0xff] %v236_v36 }
 0x244   : > { %422 = shalt.err (!%p419_p5)
}
 0x245   : > { %s423_s26 = scalar_lea.hbm %s578_s18, 128  ;;  %s427_s29 = scalar_lea.hbm %s627_s2, 256 }
 0x246   : > { %p424_p6 = scmp.ne.s32.totalorder %s578_s18, %s423_s26  ;;  %p428_p10 = scmp.lt.u32.totalorder %s578_s18, %s627_s2 }
 0x247   : > { %p429_p11 = scmp.lt.u32.totalorder %s427_s29, %s423_s26  ;;  %p431_p13 = scmp.lt.u32.totalorder %s423_s26, %s578_s18 }
 0x248   : > { %p425_p7 = pnand %p424_p6, %p547_p4 }
 0x249   : > { %p430_p12 = por %p429_p11, %p428_p10 }
 0x24a   : > { %p426_p9 = pneg %p425_p7 }
 0x24b   : > { %p432_p0 = por %p431_p13, %p430_p12 }
 0x24d   : > { %p433_p1 = pnand %p432_p0, %p426_p9 }
 0x24f   : > { %436 = shalt.err (!%p433_p1)
}
 0x250   : > { %345 = dma.vmem_to_hbm [thread:$0]  (%p547_p4), %s580_s7, 128, %s578_s18, %s239_s20  }
 0x251 PF: > { %p351_p2 = scmp.ge.s32.totalorder %s487_s14, 2  ;;  %s264_s4 = sand.u32 1, %s467_s9  }
 0x252   : > { %s265_s5 = scalar_lea.sflag [#allocation4], %s264_s4 }
 0x253   : > { %p348_p3 = pnand %p351_p2, %p554_p8 }
 0x255   : > { %462 = dma.done.wait (!%p348_p3), %s265_s5, 128  }
 0x256   : > { %464 = vsyncadd (!%p348_p3), %s265_s5, 4294967168  ;;  %s15_s14 = sadd.s32 1, %s487_s14   ;;  %s630_s9 = smov %s471_s10 }
 0x257   : > { %p12_p5 = scmp.ge.s32.totalorder %s15_s14, 4   ;;  %s631_s10 = smov %s475_s11 }
 0x258   : > { %s632_s11 = smov %s560_s22  ;;  %s633_s12 = smov %s483_s13 }
 0x259   : > { %s634_s13 = smov %s636_s17  ;;  %14 = sbr.rel (!%p12_p5) target bundleno = 4 (0x4), region = 74 }
 0x260   :  { %270 = vsyncpa [#allocation4], 1 }
 0x261   :  { %272 = vsyncpa [#allocation4 + $0x1], 1 }

</bundles_post_ra>
